<compile_context>
chip_gen: v5e
topology: v5e:2x2
jax: 0.10.0
libtpu: 0.0.40
codegen_flags: <defaults>
</compile_context>

<pallas_src>
import functools

import jax
import jax.numpy as jnp
from jax.experimental import pallas as pl
from jax.experimental.pallas import tpu as pltpu


def _round_up(x, m):
    return ((x + m - 1) // m) * m


def _event_embedding_kernel(emb_size, idx_ref, bigm_ref, bias_ref, out_ref):
    """One fused MXU pass per batch tile.

    idx_ref : (tile_b, L_total) int32, indices already offset per sequence block.
    bigm_ref: (K_pad, out_lanes)   fused [emb | emb@W] blocks (scales pre-folded).
    bias_ref: (1, out_lanes) f32   combined bias in lanes [E, 2E), zeros elsewhere.
    out_ref : (tile_b, out_lanes)  lanes [0,E)=trigger mean, [E,2E)=tanh(event).
    """
    idx = idx_ref[...]                                  # (tile_b, L_total) int32
    tile_b, n_cols = idx.shape
    k_pad = bigm_ref.shape[0]

    # Incremental weighted one-hot counts: only a (tile_b, K_pad) value stays
    # live.  Built in f32 (counts are exact small integers; v5e VALU has no
    # bf16); cast to the MXU operand dtype only at the dot below.
    lane = jax.lax.broadcasted_iota(jnp.int32, (tile_b, k_pad), 1)
    counts = jnp.zeros((tile_b, k_pad), jnp.float32)
    for col in range(n_cols):                           # static unroll, L_total small
        counts = counts + (idx[:, col:col + 1] == lane).astype(jnp.float32)

    # Single MXU matmul = gather-mean + all three Linear projections.
    pre = jnp.dot(counts.astype(bigm_ref.dtype), bigm_ref[...],
                  preferred_element_type=jnp.float32)
    pre = pre + bias_ref[...]                           # f32 accumulation throughout

    # tanh only on the event lanes; lane-select on the VPU (EUP tanh on the
    # extra lanes rides a free slot) instead of an in-kernel concatenate.
    out_lane = jax.lax.broadcasted_iota(jnp.int32, pre.shape, 1)
    out_ref[...] = jnp.where(out_lane >= emb_size, jnp.tanh(pre), pre
                             ).astype(out_ref.dtype)


def event_embedding_forward(trigger, trigger_agent, trigger_object, params,
                            compute_dtype=jnp.float32):
    """Mirrors EventEmbedding.forward. Returns (tri, event), each (B, 1, E)."""
    emb = params["embedding"].astype(jnp.float32)       # (V, E)
    V, E = emb.shape
    B, L_tri = trigger.shape
    use_agnt = trigger_agent.shape[1] != 0              # static shapes -> Python bools
    use_obj = trigger_object.shape[1] != 0

    # ---- fold gather-mean + Linears into one (K, 2E) matrix (one-time cost) ----
    zeros_ve = jnp.zeros((V, E), jnp.float32)
    blocks = [jnp.concatenate([emb, emb @ params["w0"]], axis=1) * (1.0 / L_tri)]
    idx_cols = [trigger.astype(jnp.int32)]
    bias = params["b0"]
    if use_agnt:
        L_agnt = trigger_agent.shape[1]
        # The reference adds the agent projection TWICE; fold the 2x into the
        # per-block scale so W1 itself is not modified.
        blocks.append(jnp.concatenate([zeros_ve, emb @ params["w1"]], axis=1)
                      * (2.0 / L_agnt))
        idx_cols.append(trigger_agent.astype(jnp.int32) + V * (len(blocks) - 1))
        bias = bias + 2.0 * params["b1"]
    if use_obj:
        L_obj = trigger_object.shape[1]
        blocks.append(jnp.concatenate([zeros_ve, emb @ params["w2"]], axis=1)
                      * (1.0 / L_obj))
        idx_cols.append(trigger_object.astype(jnp.int32) + V * (len(blocks) - 1))
        bias = bias + params["b2"]

    n_blk = len(blocks)
    K = n_blk * V
    K_pad = _round_up(K, 128)            # lane-dense counts / aligned MXU K dim
    out_lanes = _round_up(2 * E, 128)    # lane-dense output -> unmasked full vst

    bigm = jnp.concatenate(blocks, axis=0)                              # (K, 2E)
    bigm = jnp.pad(bigm, ((0, K_pad - K), (0, out_lanes - 2 * E)))
    bigm = bigm.astype(compute_dtype)                                   # bf16 option
    bias_full = jnp.pad(bias.reshape(1, E).astype(jnp.float32),
                        ((0, 0), (E, out_lanes - 2 * E)))               # (1, out_lanes)

    merged_idx = jnp.concatenate(idx_cols, axis=1)                      # (B, L_total)
    L_total = merged_idx.shape[1]

    # ---- batch tiling: fixed sublane-aligned tile, pad B, grid = B_pad/tile ----
    tile_b = min(256, _round_up(B, 8))
    B_pad = _round_up(B, tile_b)
    if B_pad != B:
        merged_idx = jnp.pad(merged_idx, ((0, B_pad - B), (0, 0)))
    grid = (B_pad // tile_b,)

    kernel = functools.partial(_event_embedding_kernel, E)
    out = pl.pallas_call(
        kernel,
        out_shape=jax.ShapeDtypeStruct((B_pad, out_lanes), jnp.float32),
        grid=grid,
        in_specs=[
            pl.BlockSpec((tile_b, L_total), lambda i: (i, 0)),   # merged indices
            pl.BlockSpec((K_pad, out_lanes), lambda i: (0, 0)),  # fused BigM (resident)
            pl.BlockSpec((1, out_lanes), lambda i: (0, 0)),      # fused bias
        ],
        out_specs=pl.BlockSpec((tile_b, out_lanes), lambda i: (i, 0)),
        compiler_params=pltpu.CompilerParams(
            dimension_semantics=("parallel",)),
        # vmem_limit_bytes left at default: BigM here is a few hundred KiB.  Set
        # it explicitly (esp. on v5e, 16 MiB default) once V*E grows.
    )(merged_idx, bigm, bias_full)

    tri_mean = out[:B, :E]
    event = out[:B, E:2 * E]
    # torch: .unsqueeze(1)
    return tri_mean[:, None, :], event[:, None, :]


def _reference_forward(trigger, trigger_agent, trigger_object, params):
    """Pure-JAX reference of the PyTorch forward (for verification)."""
    emb = params["embedding"]
    tri_m = jnp.mean(jnp.take(emb, trigger, axis=0), axis=1)
    event = tri_m @ params["w0"] + params["b0"]
    if trigger_agent.shape[1] != 0:
        agnt_m = jnp.mean(jnp.take(emb, trigger_agent, axis=0), axis=1)
        event = event + (agnt_m @ params["w1"] + params["b1"])
        event = event + (agnt_m @ params["w1"] + params["b1"])   # double add, as in torch
    if trigger_object.shape[1] != 0:
        obj_m = jnp.mean(jnp.take(emb, trigger_object, axis=0), axis=1)
        event = event + (obj_m @ params["w2"] + params["b2"])
    event = jnp.tanh(event)
    return tri_m[:, None, :], event[:, None, :]


if __name__ == "__main__":
    B = 2          # batch
    E = 32         # embedding_size
    V = 50         # vocab size
    L_TRI, L_AGNT, L_OBJ = 8, 6, 5

    key = jax.random.PRNGKey(0)
    k_emb, k_w0, k_b0, k_w1, k_b1, k_w2, k_b2, k_t, k_a, k_o = jax.random.split(key, 10)

    params = {
        "embedding": jax.random.normal(k_emb, (V, E), dtype=jnp.float32) * 0.1,
        "w0": jax.random.normal(k_w0, (E, E), dtype=jnp.float32) * 0.1,
        "b0": jax.random.normal(k_b0, (1, E), dtype=jnp.float32) * 0.1,
        "w1": jax.random.normal(k_w1, (E, E), dtype=jnp.float32) * 0.1,
        "b1": jax.random.normal(k_b1, (1, E), dtype=jnp.float32) * 0.1,
        "w2": jax.random.normal(k_w2, (E, E), dtype=jnp.float32) * 0.1,
        "b2": jax.random.normal(k_b2, (1, E), dtype=jnp.float32) * 0.1,
    }

    trigger = jax.random.randint(k_t, (B, L_TRI), 0, V)
    trigger_agent = jax.random.randint(k_a, (B, L_AGNT), 0, V)
    trigger_object = jax.random.randint(k_o, (B, L_OBJ), 0, V)

    # Case 1: all three sequences present (f32 path, tight tolerance).
    tri_out, event_out = event_embedding_forward(
        trigger, trigger_agent, trigger_object, params)
    jax.block_until_ready((tri_out, event_out))
    tri_ref, event_ref = _reference_forward(
        trigger, trigger_agent, trigger_object, params)
    assert tri_out.shape == (B, 1, E) and event_out.shape == (B, 1, E)
    assert jnp.allclose(tri_out, tri_ref, atol=1e-5, rtol=1e-5)
    assert jnp.allclose(event_out, event_ref, atol=1e-5, rtol=1e-5)

    # Case 2: empty object sequence (exercises the variable-arity path).
    trigger_object_empty = jnp.zeros((B, 0), dtype=jnp.int32)
    tri_out2, event_out2 = event_embedding_forward(
        trigger, trigger_agent, trigger_object_empty, params)
    jax.block_until_ready((tri_out2, event_out2))
    tri_ref2, event_ref2 = _reference_forward(
        trigger, trigger_agent, trigger_object_empty, params)
    assert tri_out2.shape == (B, 1, E) and event_out2.shape == (B, 1, E)
    assert jnp.allclose(tri_out2, tri_ref2, atol=1e-5, rtol=1e-5)
    assert jnp.allclose(event_out2, event_ref2, atol=1e-5, rtol=1e-5)

    # Case 3: bf16 fused-table path (2x MXU throughput on v6e/v7x); counts stay
    # exact integers and accumulation stays f32, so only weight rounding differs.
    tri_out3, event_out3 = event_embedding_forward(
        trigger, trigger_agent, trigger_object, params,
        compute_dtype=jnp.bfloat16)
    jax.block_until_ready((tri_out3, event_out3))
    assert jnp.allclose(tri_out3, tri_ref, atol=2e-2, rtol=2e-2)
    assert jnp.allclose(event_out3, event_ref, atol=2e-2, rtol=2e-2)

    print("KERNEL_OK")
</pallas_src>

<mosaic_0001>
module attributes {stable_mosaic.version = 11 : i64} {
  func.func @_event_embedding_kernel(%arg0: i32, %arg1: memref<8x19xi32, #tpu.memory_space<vmem>>, %arg2: memref<256x128xf32, #tpu.memory_space<vmem>>, %arg3: memref<1x128xf32, #tpu.memory_space<vmem>>, %arg4: memref<8x128xf32, #tpu.memory_space<vmem>>) attributes {dimension_semantics = [#tpu.dimension_semantics<parallel>], iteration_bounds = array<i64: 1>, scalar_prefetch = 0 : i64, scratch_operands = 0 : i64, tpu.core_type = #tpu.core_type<tc>, window_params = [{transform_indices = @transform_0, window_bounds = array<i64: 8, 19>}, {pipeline_mode = #tpu.pipeline_mode<synchronous>, transform_indices = @transform_1, window_bounds = array<i64: 256, 128>}, {pipeline_mode = #tpu.pipeline_mode<synchronous>, transform_indices = @transform_2, window_bounds = array<i64: 1, 128>}, {transform_indices = @transform_3, window_bounds = array<i64: 8, 128>}]} {
    %c0 = arith.constant 0 : index
    %c0_0 = arith.constant 0 : index
    %0 = vector.load %arg1[%c0, %c0_0] : memref<8x19xi32, #tpu.memory_space<vmem>>, vector<8x19xi32>
    %1 = tpu.iota {dimensions = array<i32: 1>} : vector<8x256xi32>
    %cst = arith.constant 0.000000e+00 : f32
    %2 = vector.broadcast %cst : f32 to vector<8x256xf32>
    %3 = vector.extract_strided_slice %0 {offsets = [0, 0], sizes = [8, 1], strides = [1, 1]} : vector<8x19xi32> to vector<8x1xi32>
    %4 = vector.broadcast %3 : vector<8x1xi32> to vector<8x256xi32>
    %5 = arith.cmpi eq, %4, %1 : vector<8x256xi32>
    %6 = arith.extui %5 : vector<8x256xi1> to vector<8x256xi32>
    %7 = arith.sitofp %6 : vector<8x256xi32> to vector<8x256xf32>
    %8 = arith.addf %2, %7 : vector<8x256xf32>
    %9 = vector.extract_strided_slice %0 {offsets = [0, 1], sizes = [8, 1], strides = [1, 1]} : vector<8x19xi32> to vector<8x1xi32>
    %10 = vector.broadcast %9 : vector<8x1xi32> to vector<8x256xi32>
    %11 = arith.cmpi eq, %10, %1 : vector<8x256xi32>
    %12 = arith.extui %11 : vector<8x256xi1> to vector<8x256xi32>
    %13 = arith.sitofp %12 : vector<8x256xi32> to vector<8x256xf32>
    %14 = arith.addf %8, %13 : vector<8x256xf32>
    %15 = vector.extract_strided_slice %0 {offsets = [0, 2], sizes = [8, 1], strides = [1, 1]} : vector<8x19xi32> to vector<8x1xi32>
    %16 = vector.broadcast %15 : vector<8x1xi32> to vector<8x256xi32>
    %17 = arith.cmpi eq, %16, %1 : vector<8x256xi32>
    %18 = arith.extui %17 : vector<8x256xi1> to vector<8x256xi32>
    %19 = arith.sitofp %18 : vector<8x256xi32> to vector<8x256xf32>
    %20 = arith.addf %14, %19 : vector<8x256xf32>
    %21 = vector.extract_strided_slice %0 {offsets = [0, 3], sizes = [8, 1], strides = [1, 1]} : vector<8x19xi32> to vector<8x1xi32>
    %22 = vector.broadcast %21 : vector<8x1xi32> to vector<8x256xi32>
    %23 = arith.cmpi eq, %22, %1 : vector<8x256xi32>
    %24 = arith.extui %23 : vector<8x256xi1> to vector<8x256xi32>
    %25 = arith.sitofp %24 : vector<8x256xi32> to vector<8x256xf32>
    %26 = arith.addf %20, %25 : vector<8x256xf32>
    %27 = vector.extract_strided_slice %0 {offsets = [0, 4], sizes = [8, 1], strides = [1, 1]} : vector<8x19xi32> to vector<8x1xi32>
    %28 = vector.broadcast %27 : vector<8x1xi32> to vector<8x256xi32>
    %29 = arith.cmpi eq, %28, %1 : vector<8x256xi32>
    %30 = arith.extui %29 : vector<8x256xi1> to vector<8x256xi32>
    %31 = arith.sitofp %30 : vector<8x256xi32> to vector<8x256xf32>
    %32 = arith.addf %26, %31 : vector<8x256xf32>
    %33 = vector.extract_strided_slice %0 {offsets = [0, 5], sizes = [8, 1], strides = [1, 1]} : vector<8x19xi32> to vector<8x1xi32>
    %34 = vector.broadcast %33 : vector<8x1xi32> to vector<8x256xi32>
    %35 = arith.cmpi eq, %34, %1 : vector<8x256xi32>
    %36 = arith.extui %35 : vector<8x256xi1> to vector<8x256xi32>
    %37 = arith.sitofp %36 : vector<8x256xi32> to vector<8x256xf32>
    %38 = arith.addf %32, %37 : vector<8x256xf32>
    %39 = vector.extract_strided_slice %0 {offsets = [0, 6], sizes = [8, 1], strides = [1, 1]} : vector<8x19xi32> to vector<8x1xi32>
    %40 = vector.broadcast %39 : vector<8x1xi32> to vector<8x256xi32>
    %41 = arith.cmpi eq, %40, %1 : vector<8x256xi32>
    %42 = arith.extui %41 : vector<8x256xi1> to vector<8x256xi32>
    %43 = arith.sitofp %42 : vector<8x256xi32> to vector<8x256xf32>
    %44 = arith.addf %38, %43 : vector<8x256xf32>
    %45 = vector.extract_strided_slice %0 {offsets = [0, 7], sizes = [8, 1], strides = [1, 1]} : vector<8x19xi32> to vector<8x1xi32>
    %46 = vector.broadcast %45 : vector<8x1xi32> to vector<8x256xi32>
    %47 = arith.cmpi eq, %46, %1 : vector<8x256xi32>
    %48 = arith.extui %47 : vector<8x256xi1> to vector<8x256xi32>
    %49 = arith.sitofp %48 : vector<8x256xi32> to vector<8x256xf32>
    %50 = arith.addf %44, %49 : vector<8x256xf32>
    %51 = vector.extract_strided_slice %0 {offsets = [0, 8], sizes = [8, 1], strides = [1, 1]} : vector<8x19xi32> to vector<8x1xi32>
    %52 = vector.broadcast %51 : vector<8x1xi32> to vector<8x256xi32>
    %53 = arith.cmpi eq, %52, %1 : vector<8x256xi32>
    %54 = arith.extui %53 : vector<8x256xi1> to vector<8x256xi32>
    %55 = arith.sitofp %54 : vector<8x256xi32> to vector<8x256xf32>
    %56 = arith.addf %50, %55 : vector<8x256xf32>
    %57 = vector.extract_strided_slice %0 {offsets = [0, 9], sizes = [8, 1], strides = [1, 1]} : vector<8x19xi32> to vector<8x1xi32>
    %58 = vector.broadcast %57 : vector<8x1xi32> to vector<8x256xi32>
    %59 = arith.cmpi eq, %58, %1 : vector<8x256xi32>
    %60 = arith.extui %59 : vector<8x256xi1> to vector<8x256xi32>
    %61 = arith.sitofp %60 : vector<8x256xi32> to vector<8x256xf32>
    %62 = arith.addf %56, %61 : vector<8x256xf32>
    %63 = vector.extract_strided_slice %0 {offsets = [0, 10], sizes = [8, 1], strides = [1, 1]} : vector<8x19xi32> to vector<8x1xi32>
    %64 = vector.broadcast %63 : vector<8x1xi32> to vector<8x256xi32>
    %65 = arith.cmpi eq, %64, %1 : vector<8x256xi32>
    %66 = arith.extui %65 : vector<8x256xi1> to vector<8x256xi32>
    %67 = arith.sitofp %66 : vector<8x256xi32> to vector<8x256xf32>
    %68 = arith.addf %62, %67 : vector<8x256xf32>
    %69 = vector.extract_strided_slice %0 {offsets = [0, 11], sizes = [8, 1], strides = [1, 1]} : vector<8x19xi32> to vector<8x1xi32>
    %70 = vector.broadcast %69 : vector<8x1xi32> to vector<8x256xi32>
    %71 = arith.cmpi eq, %70, %1 : vector<8x256xi32>
    %72 = arith.extui %71 : vector<8x256xi1> to vector<8x256xi32>
    %73 = arith.sitofp %72 : vector<8x256xi32> to vector<8x256xf32>
    %74 = arith.addf %68, %73 : vector<8x256xf32>
    %75 = vector.extract_strided_slice %0 {offsets = [0, 12], sizes = [8, 1], strides = [1, 1]} : vector<8x19xi32> to vector<8x1xi32>
    %76 = vector.broadcast %75 : vector<8x1xi32> to vector<8x256xi32>
    %77 = arith.cmpi eq, %76, %1 : vector<8x256xi32>
    %78 = arith.extui %77 : vector<8x256xi1> to vector<8x256xi32>
    %79 = arith.sitofp %78 : vector<8x256xi32> to vector<8x256xf32>
    %80 = arith.addf %74, %79 : vector<8x256xf32>
    %81 = vector.extract_strided_slice %0 {offsets = [0, 13], sizes = [8, 1], strides = [1, 1]} : vector<8x19xi32> to vector<8x1xi32>
    %82 = vector.broadcast %81 : vector<8x1xi32> to vector<8x256xi32>
    %83 = arith.cmpi eq, %82, %1 : vector<8x256xi32>
    %84 = arith.extui %83 : vector<8x256xi1> to vector<8x256xi32>
    %85 = arith.sitofp %84 : vector<8x256xi32> to vector<8x256xf32>
    %86 = arith.addf %80, %85 : vector<8x256xf32>
    %87 = vector.extract_strided_slice %0 {offsets = [0, 14], sizes = [8, 1], strides = [1, 1]} : vector<8x19xi32> to vector<8x1xi32>
    %88 = vector.broadcast %87 : vector<8x1xi32> to vector<8x256xi32>
    %89 = arith.cmpi eq, %88, %1 : vector<8x256xi32>
    %90 = arith.extui %89 : vector<8x256xi1> to vector<8x256xi32>
    %91 = arith.sitofp %90 : vector<8x256xi32> to vector<8x256xf32>
    %92 = arith.addf %86, %91 : vector<8x256xf32>
    %93 = vector.extract_strided_slice %0 {offsets = [0, 15], sizes = [8, 1], strides = [1, 1]} : vector<8x19xi32> to vector<8x1xi32>
    %94 = vector.broadcast %93 : vector<8x1xi32> to vector<8x256xi32>
    %95 = arith.cmpi eq, %94, %1 : vector<8x256xi32>
    %96 = arith.extui %95 : vector<8x256xi1> to vector<8x256xi32>
    %97 = arith.sitofp %96 : vector<8x256xi32> to vector<8x256xf32>
    %98 = arith.addf %92, %97 : vector<8x256xf32>
    %99 = vector.extract_strided_slice %0 {offsets = [0, 16], sizes = [8, 1], strides = [1, 1]} : vector<8x19xi32> to vector<8x1xi32>
    %100 = vector.broadcast %99 : vector<8x1xi32> to vector<8x256xi32>
    %101 = arith.cmpi eq, %100, %1 : vector<8x256xi32>
    %102 = arith.extui %101 : vector<8x256xi1> to vector<8x256xi32>
    %103 = arith.sitofp %102 : vector<8x256xi32> to vector<8x256xf32>
    %104 = arith.addf %98, %103 : vector<8x256xf32>
    %105 = vector.extract_strided_slice %0 {offsets = [0, 17], sizes = [8, 1], strides = [1, 1]} : vector<8x19xi32> to vector<8x1xi32>
    %106 = vector.broadcast %105 : vector<8x1xi32> to vector<8x256xi32>
    %107 = arith.cmpi eq, %106, %1 : vector<8x256xi32>
    %108 = arith.extui %107 : vector<8x256xi1> to vector<8x256xi32>
    %109 = arith.sitofp %108 : vector<8x256xi32> to vector<8x256xf32>
    %110 = arith.addf %104, %109 : vector<8x256xf32>
    %111 = vector.extract_strided_slice %0 {offsets = [0, 18], sizes = [8, 1], strides = [1, 1]} : vector<8x19xi32> to vector<8x1xi32>
    %112 = vector.broadcast %111 : vector<8x1xi32> to vector<8x256xi32>
    %113 = arith.cmpi eq, %112, %1 : vector<8x256xi32>
    %114 = arith.extui %113 : vector<8x256xi1> to vector<8x256xi32>
    %115 = arith.sitofp %114 : vector<8x256xi32> to vector<8x256xf32>
    %116 = arith.addf %110, %115 : vector<8x256xf32>
    %c0_1 = arith.constant 0 : index
    %c0_2 = arith.constant 0 : index
    %117 = vector.load %arg2[%c0_1, %c0_2] : memref<256x128xf32, #tpu.memory_space<vmem>>, vector<256x128xf32>
    %cst_3 = arith.constant dense<0.000000e+00> : vector<8x128xf32>
    %118 = tpu.matmul %116, %117, %cst_3 {dimension_numbers = #tpu.dot_dimension_numbers<[1], [0], [0], [1], [0, 0, 1, 1], [], []>} : vector<8x256xf32>, vector<256x128xf32>, vector<8x128xf32> -> vector<8x128xf32>
    %c0_4 = arith.constant 0 : index
    %c0_5 = arith.constant 0 : index
    %119 = vector.load %arg3[%c0_4, %c0_5] : memref<1x128xf32, #tpu.memory_space<vmem>>, vector<1x128xf32>
    %120 = vector.broadcast %119 : vector<1x128xf32> to vector<8x128xf32>
    %121 = arith.addf %118, %120 : vector<8x128xf32>
    %122 = tpu.iota {dimensions = array<i32: 1>} : vector<8x128xi32>
    %c32_i32 = arith.constant 32 : i32
    %123 = vector.broadcast %c32_i32 : i32 to vector<8x128xi32>
    %124 = arith.cmpi sge, %122, %123 : vector<8x128xi32>
    %125 = math.tanh %121 : vector<8x128xf32>
    %126 = arith.select %124, %125, %121 : vector<8x128xi1>, vector<8x128xf32>
    %c0_6 = arith.constant 0 : index
    %c0_7 = arith.constant 0 : index
    %127 = vector.load %arg4[%c0_6, %c0_7] : memref<8x128xf32, #tpu.memory_space<vmem>>, vector<8x128xf32>
    tpu.vector_store %arg4[%c0_6, %c0_7], %126 {strides = array<i32>} : memref<8x128xf32, #tpu.memory_space<vmem>>, vector<8x128xf32>,
    return
  }
  func.func @transform_0(%arg0: i32) -> (i32, i32) {
    %c0_i32 = arith.constant 0 : i32
    %c0_i32_0 = arith.constant 0 : i32
    return %arg0, %c0_i32 : i32, i32
  }
  func.func @transform_1(%arg0: i32) -> (i32, i32) {
    %c0_i32 = arith.constant 0 : i32
    %c0_i32_0 = arith.constant 0 : i32
    %c0_i32_1 = arith.constant 0 : i32
    return %c0_i32, %c0_i32_0 : i32, i32
  }
  func.func @transform_2(%arg0: i32) -> (i32, i32) {
    %c0_i32 = arith.constant 0 : i32
    %c0_i32_0 = arith.constant 0 : i32
    %c0_i32_1 = arith.constant 0 : i32
    return %c0_i32, %c0_i32_0 : i32, i32
  }
  func.func @transform_3(%arg0: i32) -> (i32, i32) {
    %c0_i32 = arith.constant 0 : i32
    %c0_i32_0 = arith.constant 0 : i32
    return %arg0, %c0_i32 : i32, i32
  }
}

</mosaic_0001>

<bundles_post_ra>
// kernel: tpu_custom_call.1
= control target key start
LH: loop header
LB: loop body
LE: loop exit
PB: predicated region body
PF: predicated region fallthrough
CT: control target
= control target key end

     0   :  { %8 = vsyncpa [#allocation3], 0  ;;  %s674_s0 = inlined_call_operand.hbm [shape: s32[8,19], index: 0, kind: input, shape index: {}]   ;;  %s675_s1 = inlined_call_operand.hbm [shape: f32[256,128], index: 1, kind: input, shape index: {}]   ;;  %s676_s2 = inlined_call_operand.vmem [shape: f32[1,128], index: 2, kind: input, shape index: {}]   ;;  %s677_s3 = inlined_call_operand.hbm [shape: f32[8,128], index: 3, kind: output, shape index: {}]  }
   0x1   :  { %9 = vsyncpa [#allocation6], 0 }
   0x2   :  { %10 = vsyncpa [#allocation4], 0  ;;  %s16_s14 = sshll.u32 %s674_s0, 4  ;;  %s519_s15 = smov [#allocation2]   ;;  %s17_s14 = int_to_ptr.hbm [resolvable:$true] %s16_s14 }
   0x3   :  { %s18_s16 = sshll.u32 %s519_s15, 4  ;;  %s26_s19 = sshll.u32 %s675_s1, 4  ;;  %s19_s16 = int_to_ptr.vmem [resolvable:$true] %s18_s16  ;;  %s27_s19 = int_to_ptr.hbm [resolvable:$true] %s26_s19 }
   0x4   :  { %21 = dma.hbm_to_vmem [thread:$0]  %s17_s14, 128, %s19_s16, [#allocation3]  }
   0x5   :  { %s520_s20 = smov [#allocation5]   ;;  %s521_s22 = smov 128  }
   0x6   :  { %s28_s21 = sshll.u32 %s520_s20, 4  ;;  %s522_s23 = smov 8   ;;  %s29_s21 = int_to_ptr.vmem [resolvable:$true] %s28_s21 }
   0x7   :  { %34 = dma.hbm_to_vmem [thread:$0]  %s27_s19, 4096, %s29_s21, [#allocation6], %s521_s22, %s521_s22, %s522_s23  }
   0x8   :  { %513 = dma.done.wait [#allocation3], 128  }
   0x9   :  { %514 = vsyncadd [#allocation3], 4294967168 }
   0xa   :  { %515 = dma.done.wait [#allocation6], 4096  }
   0xb   :  { %516 = vsyncadd [#allocation6], 4294963200  ;;  %v523_v0 = vmov 2   ;;  %v524_v1 = vmov 0   ;;  %v525_v2 = vmov 4   ;;  %v45_v3 = vld [vmem:[#allocation2] sm:$0xff]  ;;  %v46_v21 = vlaneseq }
   0xc   :  { %421 = vset.pattern.permute.xlu1 %v523_v0  ;;  %419 = vset.pattern.permute.xlu0 %v524_v1  ;;  %v526_v4 = vmov 3   ;;  %v527_v5 = vmov 1   ;;  %v528_v6 = vmov 5   ;;  %v529_v7 = vmov 6   ;;  %v273_v23 = vld [vmem:[#allocation5 + $0x78] sm:$0xff]  ;;  %v272_v28 = vld [vmem:[#allocation5 + $0x70] sm:$0xff] }
   0xd   :  { %423 = vset.pattern.permute.xlu2 %v525_v2  ;;  %72 = vperm.xlu1 %421, %v45_v3   ;;  %v530_v8 = vmov 8   ;;  %v531_v9 = vmov 7   ;;  %v532_v10 = vmov 9   ;;  %v533_v11 = vmov 13   ;;  %v289_v24 = vld [vmem:[#allocation5 + $0xf8] sm:$0xff]  ;;  %v288_v29 = vld [vmem:[#allocation5 + $0xf0] sm:$0xff] }
   0xe   :  { %50 = vperm.xlu0 %419, %v45_v3   ;;  %94 = vperm.xlu2 %423, %v45_v3   ;;  %v534_v12 = vmov 10   ;;  %v535_v13 = vmov 11   ;;  %v536_v14 = vmov 18   ;;  %v537_v15 = vmov 12   ;;  %v271_v30 = vld [vmem:[#allocation5 + $0x68] sm:$0xff]  ;;  %v270_v33 = vld [vmem:[#allocation5 + $0x60] sm:$0xff] }
   0xf   :  { %v538_v16 = vmov 14   ;;  %v539_v17 = vmov 15   ;;  %v540_v18 = vmov 16   ;;  %v541_v19 = vmov 17   ;;  %294 = vmatpush.msra.mxu0 %v273_v23  ;;  %314 = vmatpush.msra.mxu1 %v289_v24  ;;  %v287_v31 = vld [vmem:[#allocation5 + $0xe8] sm:$0xff]  ;;  %v286_v34 = vld [vmem:[#allocation5 + $0xe0] sm:$0xff] }
  0x10   :  { %v574_v25 = vand.u32 127, %v46_v21  ;;  %v269_v35 = vld [vmem:[#allocation5 + $0x58] sm:$0xff]  ;;  %v542_v37 = vmov 0.0   ;;  %v268_v42 = vld [vmem:[#allocation5 + $0x50] sm:$0xff]  ;;  %v267_v47 = vld [vmem:[#allocation5 + $0x48] sm:$0xff]  ;;  %s543_s24 = smov [#allocation7]  }
  0x11   :  { %295 = vmatpush.msra.mxu0 %v272_v28  ;;  %315 = vmatpush.msra.mxu1 %v288_v29  ;;  %v285_v36 = vld [vmem:[#allocation5 + $0xd8] sm:$0xff]  ;;  %v284_v43 = vld [vmem:[#allocation5 + $0xd0] sm:$0xff]  ;;  %v283_v48 = vld [vmem:[#allocation5 + $0xc8] sm:$0xff]  ;;  %s343_s25 = sshll.u32 %s543_s24, 4  ;;  %s345_s28 = sshll.u32 %s677_s3, 4  ;;  %s344_s25 = int_to_ptr.vmem [resolvable:$true] %s343_s25  ;;  %s346_s28 = int_to_ptr.hbm [resolvable:$true] %s345_s28 }
  0x12   :  { %v577_v32 = vadd.s32 128, %v574_v25  ;;  %v266_v53 = vld [vmem:[#allocation5 + $0x40] sm:$0xff]  ;;  %v265_v59 = vld [vmem:[#allocation5 + $0x38] sm:$0xff]  ;;  %v264_v1 = vld [vmem:[#allocation5 + $0x30] sm:$0xff] }
  0x13   :  { %296 = vmatpush.msra.mxu0 %v271_v30  ;;  %316 = vmatpush.msra.mxu1 %v287_v31  ;;  %v282_v54 = vld [vmem:[#allocation5 + $0xc0] sm:$0xff]  ;;  %v281_v60 = vld [vmem:[#allocation5 + $0xb8] sm:$0xff]  ;;  %v280_v2 = vld [vmem:[#allocation5 + $0xb0] sm:$0xff] }
  0x14   :  { %v276_v23 = vld [vmem:[#allocation5 + $0x90] sm:$0xff]  ;;  %v259_v28 = vld [vmem:[#allocation5 + $0x8] sm:$0xff]  ;;  %v258_v30 = vld [vmem:[#allocation5] sm:$0xff] }
  0x15   :  { %422 = vset.pattern.permute.xlu1 %v526_v4  ;;  %297 = vmatpush.msra.mxu0 %v270_v33  ;;  %v275_v29 = vld [vmem:[#allocation5 + $0x88] sm:$0xff]  ;;  %v274_v31 = vld [vmem:[#allocation5 + $0x80] sm:$0xff] }
  0x16   :  { %420 = vset.pattern.permute.xlu0 %v527_v5  ;;  %83 = vperm.xlu1 %422, %v45_v3  }
  0x17   :  { %61 = vperm.xlu0 %420, %v45_v3   ;;  %424 = vset.pattern.permute.xlu2 %v528_v6  ;;  %v263_v6 = vld [vmem:[#allocation5 + $0x28] sm:$0xff] }
  0x18   :  { %105 = vperm.xlu2 %424, %v45_v3   ;;  %317 = vmatpush.msra.mxu1 %v286_v34 }
  0x19   :  { %298 = vmatpush.msra.mxu0 %v269_v35 }
  0x1a   :  { %318 = vmatpush.msra.mxu1 %v285_v36 }
  0x1b   :  { %299 = vmatpush.msra.mxu0 %v268_v42 }
  0x1c   :  { %319 = vmatpush.msra.mxu1 %v284_v43 }
  0x1d   :  { %300 = vmatpush.msra.mxu0 %v267_v47 }
  0x1e   :  { %425 = vset.pattern.permute.xlu1 %v529_v7  ;;  %320 = vmatpush.msra.mxu1 %v283_v48  ;;  %v279_v7 = vld [vmem:[#allocation5 + $0xa8] sm:$0xff] }
  0x1f   :  { %427 = vset.pattern.permute.xlu0 %v530_v8  ;;  %116 = vperm.xlu1 %425, %v45_v3   ;;  %v262_v8 = vld [vmem:[#allocation5 + $0x20] sm:$0xff] }
  0x20   :  { %138 = vperm.xlu0 %427, %v45_v3   ;;  %426 = vset.pattern.permute.xlu2 %v531_v9 }
  0x21   :  { %127 = vperm.xlu2 %426, %v45_v3   ;;  %301 = vmatpush.msra.mxu0 %v266_v53 }
  0x22   :  { %321 = vmatpush.msra.mxu1 %v282_v54 }
  0x23   :  { %302 = vmatpush.msra.mxu0 %v265_v59 }
  0x24   :  { %322 = vmatpush.msra.mxu1 %v281_v60 }
  0x25   :  { %303 = vmatpush.msra.mxu0 %v264_v1 }
  0x26   :  { %323 = vmatpush.msra.mxu1 %v280_v2 }
  0x27   :  { %428 = vset.pattern.permute.xlu1 %v532_v10  ;;  %304 = vmatpush.msra.mxu0 %v263_v6 }
  0x28   :  { %432 = vset.pattern.permute.xlu0 %v533_v11  ;;  %149 = vperm.xlu1 %428, %v45_v3  }
  0x29   :  { %193 = vperm.xlu0 %432, %v45_v3   ;;  %429 = vset.pattern.permute.xlu2 %v534_v12  ;;  %v278_v12 = vld [vmem:[#allocation5 + $0xa0] sm:$0xff] }
  0x2a   :  { %160 = vperm.xlu2 %429, %v45_v3   ;;  %324 = vmatpush.msra.mxu1 %v279_v7 }
  0x2b   :  { %305 = vmatpush.msra.mxu0 %v262_v8 }
  0x2c   :  { %325 = vmatpush.msra.mxu1 %v278_v12 }
  0x30   :  { %430 = vset.pattern.permute.xlu1 %v535_v13 }
  0x31   :  { %437 = vset.pattern.permute.xlu0 %v536_v14  ;;  %171 = vperm.xlu1 %430, %v45_v3  }
  0x32   :  { %248 = vperm.xlu0 %437, %v45_v3   ;;  %431 = vset.pattern.permute.xlu2 %v537_v15 }
  0x33   :  { %182 = vperm.xlu2 %431, %v45_v3  }
  0x39   :  { %433 = vset.pattern.permute.xlu1 %v538_v16 }
  0x3a   :  { %204 = vperm.xlu1 %433, %v45_v3  }
  0x3b   :  { %434 = vset.pattern.permute.xlu2 %v539_v17  ;;  %v261_v17 = vld [vmem:[#allocation5 + $0x18] sm:$0xff] }
  0x3c   :  { %215 = vperm.xlu2 %434, %v45_v3   ;;  %306 = vmatpush.msra.mxu0 %v261_v17 }
  0x42   :  { %435 = vset.pattern.permute.xlu1 %v540_v18  ;;  %v277_v18 = vld [vmem:[#allocation5 + $0x98] sm:$0xff] }
  0x43   :  { %226 = vperm.xlu1 %435, %v45_v3   ;;  %326 = vmatpush.msra.mxu1 %v277_v18 }
  0x44   :  { %436 = vset.pattern.permute.xlu2 %v541_v19 }
  0x45   :  { %237 = vperm.xlu2 %436, %v45_v3   ;;  %327 = vmatpush.msra.mxu1 %v276_v23 }
  0x47   :  { %328 = vmatpush.msra.mxu1 %v275_v29 }
  0x49   :  { %329 = vmatpush.msra.mxu1 %v274_v31 }
  0x68   :  { %v570_v20 = vpop.permute.xlu2 %94 }
  0x69   :  { %vm96_vm8 = vcmp.eq.s32.totalorder %v570_v20, %v574_v25  ;;  %vm97_vm9 = vcmp.eq.s32.totalorder %v570_v20, %v577_v32 }
  0x6a   :  { %v364_v63 = vsel %vm96_vm8, 1.0, %v542_v37  ;;  %v365_v0 = vsel %vm97_vm9, 1.0, %v542_v37 }
  0x72   :  { %v572_v22 = vpop.permute.xlu2 %105 }
  0x73   :  { %vm107_vm10 = vcmp.eq.s32.totalorder %v572_v22, %v574_v25  ;;  %vm108_vm11 = vcmp.eq.s32.totalorder %v572_v22, %v577_v32  ;;  %v260_v22 = vld [vmem:[#allocation5 + $0x10] sm:$0xff] }
  0x74   :  { %v366_v9 = vsel %vm107_vm10, 1.0, %v542_v37  ;;  %v367_v10 = vsel %vm108_vm11, 1.0, %v542_v37  ;;  %307 = vmatpush.msra.mxu0 %v260_v22 }
  0x76   :  { %308 = vmatpush.msra.mxu0 %v259_v28 }
  0x78   :  { %309 = vmatpush.msra.mxu0 %v258_v30 }
  0x7b   :  { %v587_v44 = vpop.permute.xlu2 %127 }
  0x7c   :  { %vm129_vm14 = vcmp.eq.s32.totalorder %v587_v44, %v574_v25  ;;  %vm130_vm15 = vcmp.eq.s32.totalorder %v587_v44, %v577_v32 }
  0x7d   :  { %v370_v24 = vsel %vm129_vm14, 1.0, %v542_v37 }
  0x7f   :  { %v73_v26 = vpop.permute.xlu1 %72 }
  0x80   :  { %v51_v27 = vpop.permute.xlu0 %50  ;;  %vm74_vm2 = vcmp.eq.s32.totalorder %v73_v26, %v574_v25  ;;  %vm75_vm3 = vcmp.eq.s32.totalorder %v73_v26, %v577_v32  ;;  %v371_v26 = vsel %vm130_vm15, 1.0, %v542_v37 }
  0x81   :  { %vm52_vm0 = vcmp.eq.s32.totalorder %v51_v27, %v574_v25  ;;  %vm53_vm1 = vcmp.eq.s32.totalorder %v51_v27, %v577_v32  ;;  %v360_v51 = vsel %vm74_vm2, 1.0, %v542_v37  ;;  %v361_v52 = vsel %vm75_vm3, 1.0, %v542_v37 }
  0x82   :  { %v356_v38 = vsel %vm52_vm0, 1.0, %v542_v37  ;;  %v357_v39 = vsel %vm53_vm1, 1.0, %v542_v37 }
  0x84   :  { %v161_v11 = vpop.permute.xlu2 %160 }
  0x88   :  { %v84_v40 = vpop.permute.xlu1 %83 }
  0x89   :  { %v62_v41 = vpop.permute.xlu0 %61  ;;  %vm85_vm6 = vcmp.eq.s32.totalorder %v84_v40, %v574_v25  ;;  %vm86_vm7 = vcmp.eq.s32.totalorder %v84_v40, %v577_v32 }
  0x8a   :  { %vm63_vm4 = vcmp.eq.s32.totalorder %v62_v41, %v574_v25  ;;  %vm64_vm5 = vcmp.eq.s32.totalorder %v62_v41, %v577_v32  ;;  %v362_v57 = vsel %vm85_vm6, 1.0, %v542_v37  ;;  %v363_v58 = vsel %vm86_vm7, 1.0, %v542_v37 }
  0x8b   :  { %v358_v45 = vsel %vm63_vm4, 1.0, %v542_v37  ;;  %v359_v46 = vsel %vm64_vm5, 1.0, %v542_v37  ;;  %vm162_vm4 = vcmp.eq.s32.totalorder %v161_v11, %v574_v25  ;;  %vm163_vm5 = vcmp.eq.s32.totalorder %v161_v11, %v577_v32 }
  0x8c   :  { %v69_v49 = vadd.f32 %v358_v45, %v356_v38  ;;  %v70_v50 = vadd.f32 %v359_v46, %v357_v39  ;;  %v376_v45 = vsel %vm162_vm4, 1.0, %v542_v37  ;;  %v377_v46 = vsel %vm163_vm5, 1.0, %v542_v37 }
  0x8d   :  { %v183_v38 = vpop.permute.xlu2 %182 }
  0x8e   :  { %v80_v55 = vadd.f32 %v360_v51, %v69_v49  ;;  %v81_v56 = vadd.f32 %v361_v52, %v70_v50  ;;  %vm184_vm8 = vcmp.eq.s32.totalorder %v183_v38, %v574_v25  ;;  %vm185_vm9 = vcmp.eq.s32.totalorder %v183_v38, %v577_v32 }
  0x90   :  { %v91_v61 = vadd.f32 %v362_v57, %v80_v55  ;;  %v92_v62 = vadd.f32 %v363_v58, %v81_v56  ;;  %v380_v56 = vsel %vm184_vm8, 1.0, %v542_v37  ;;  %v381_v57 = vsel %vm185_vm9, 1.0, %v542_v37 }
  0x91   :  { %v117_v5 = vpop.permute.xlu1 %116 }
  0x92   :  { %v102_v3 = vadd.f32 %v364_v63, %v91_v61  ;;  %v103_v4 = vadd.f32 %v365_v0, %v92_v62  ;;  %vm118_vm12 = vcmp.eq.s32.totalorder %v117_v5, %v574_v25  ;;  %vm119_vm13 = vcmp.eq.s32.totalorder %v117_v5, %v577_v32  ;;  %v139_v19 = vpop.permute.xlu0 %138 }
  0x93   :  { %v368_v15 = vsel %vm118_vm12, 1.0, %v542_v37  ;;  %v369_v16 = vsel %vm119_vm13, 1.0, %v542_v37  ;;  %vm140_vm0 = vcmp.eq.s32.totalorder %v139_v19, %v574_v25  ;;  %vm141_vm1 = vcmp.eq.s32.totalorder %v139_v19, %v577_v32 }
  0x94   :  { %v113_v13 = vadd.f32 %v366_v9, %v102_v3  ;;  %v114_v14 = vadd.f32 %v367_v10, %v103_v4  ;;  %v372_v35 = vsel %vm140_vm0, 1.0, %v542_v37  ;;  %v373_v36 = vsel %vm141_vm1, 1.0, %v542_v37 }
  0x96   :  { %v124_v20 = vadd.f32 %v368_v15, %v113_v13  ;;  %v125_v21 = vadd.f32 %v369_v16, %v114_v14  ;;  %v216_v53 = vpop.permute.xlu2 %215 }
  0x97   :  { %vm217_vm14 = vcmp.eq.s32.totalorder %v216_v53, %v574_v25  ;;  %vm218_vm15 = vcmp.eq.s32.totalorder %v216_v53, %v577_v32 }
  0x98   :  { %v135_v33 = vadd.f32 %v370_v24, %v124_v20  ;;  %v136_v34 = vadd.f32 %v371_v26, %v125_v21  ;;  %v386_v7 = vsel %vm217_vm14, 1.0, %v542_v37  ;;  %v387_v8 = vsel %vm218_vm15, 1.0, %v542_v37 }
  0x9a   :  { %v150_v27 = vpop.permute.xlu1 %149  ;;  %v146_v41 = vadd.f32 %v372_v35, %v135_v33  ;;  %v147_v42 = vadd.f32 %v373_v36, %v136_v34 }
  0x9b   :  { %vm151_vm2 = vcmp.eq.s32.totalorder %v150_v27, %v574_v25  ;;  %vm152_vm3 = vcmp.eq.s32.totalorder %v150_v27, %v577_v32  ;;  %v194_v52 = vpop.permute.xlu0 %193 }
  0x9c   :  { %v374_v39 = vsel %vm151_vm2, 1.0, %v542_v37  ;;  %v375_v40 = vsel %vm152_vm3, 1.0, %v542_v37  ;;  %vm195_vm10 = vcmp.eq.s32.totalorder %v194_v52, %v574_v25  ;;  %vm196_vm11 = vcmp.eq.s32.totalorder %v194_v52, %v577_v32 }
  0x9d   :  { %v157_v43 = vadd.f32 %v374_v39, %v146_v41  ;;  %v158_v44 = vadd.f32 %v375_v40, %v147_v42  ;;  %v382_v61 = vsel %vm195_vm10, 1.0, %v542_v37  ;;  %v383_v62 = vsel %vm196_vm11, 1.0, %v542_v37 }
  0x9f   :  { %v168_v50 = vadd.f32 %v376_v45, %v157_v43  ;;  %v169_v51 = vadd.f32 %v377_v46, %v158_v44  ;;  %v238_v3 = vpop.permute.xlu2 %237 }
  0xa0   :  { %vm239_vm0 = vcmp.eq.s32.totalorder %v238_v3, %v574_v25  ;;  %vm240_vm1 = vcmp.eq.s32.totalorder %v238_v3, %v577_v32 }
  0xa1   :  { %v390_v14 = vsel %vm239_vm0, 1.0, %v542_v37  ;;  %v391_v15 = vsel %vm240_vm1, 1.0, %v542_v37 }
  0xa3   :  { %v172_v47 = vpop.permute.xlu1 %171 }
  0xa4   :  { %vm173_vm6 = vcmp.eq.s32.totalorder %v172_v47, %v574_v25  ;;  %vm174_vm7 = vcmp.eq.s32.totalorder %v172_v47, %v577_v32  ;;  %v249_v6 = vpop.permute.xlu0 %248 }
  0xa5   :  { %v378_v48 = vsel %vm173_vm6, 1.0, %v542_v37  ;;  %v379_v49 = vsel %vm174_vm7, 1.0, %v542_v37  ;;  %vm250_vm2 = vcmp.eq.s32.totalorder %v249_v6, %v574_v25  ;;  %vm251_vm3 = vcmp.eq.s32.totalorder %v249_v6, %v577_v32 }
  0xa6   :  { %v179_v54 = vadd.f32 %v378_v48, %v168_v50  ;;  %v180_v55 = vadd.f32 %v379_v49, %v169_v51  ;;  %v392_v18 = vsel %vm250_vm2, 1.0, %v542_v37  ;;  %v393_v19 = vsel %vm251_vm3, 1.0, %v542_v37 }
  0xa7   :  { %vm334_vm6 = vcmp.ge.s32.totalorder %v574_v25, 32 }
  0xa8   :  { %v190_v58 = vadd.f32 %v380_v56, %v179_v54  ;;  %v191_v59 = vadd.f32 %v381_v57, %v180_v55 }
  0xaa   :  { %v201_v1 = vadd.f32 %v382_v61, %v190_v58  ;;  %v202_v2 = vadd.f32 %v383_v62, %v191_v59 }
  0xac   :  { %v205_v60 = vpop.permute.xlu1 %204 }
  0xad   :  { %vm206_vm12 = vcmp.eq.s32.totalorder %v205_v60, %v574_v25  ;;  %vm207_vm13 = vcmp.eq.s32.totalorder %v205_v60, %v577_v32 }
  0xae   :  { %v384_v63 = vsel %vm206_vm12, 1.0, %v542_v37  ;;  %v385_v0 = vsel %vm207_vm13, 1.0, %v542_v37 }
  0xaf   :  { %v212_v4 = vadd.f32 %v384_v63, %v201_v1  ;;  %v213_v5 = vadd.f32 %v385_v0, %v202_v2 }
  0xb1   :  { %v223_v10 = vadd.f32 %v386_v7, %v212_v4  ;;  %v224_v11 = vadd.f32 %v387_v8, %v213_v5 }
  0xb5   :  { %v227_v9 = vpop.permute.xlu1 %226 }
  0xb6   :  { %vm228_vm4 = vcmp.eq.s32.totalorder %v227_v9, %v574_v25  ;;  %vm229_vm5 = vcmp.eq.s32.totalorder %v227_v9, %v577_v32  ;;  %v438_v32 = vld [vmem:[%s676_s2] ss:$0 sm:$0xff] }
  0xb7   :  { %v388_v12 = vsel %vm228_vm4, 1.0, %v542_v37  ;;  %v389_v13 = vsel %vm229_vm5, 1.0, %v542_v37 }
  0xb8   :  { %v234_v16 = vadd.f32 %v388_v12, %v223_v10  ;;  %v235_v17 = vadd.f32 %v389_v13, %v224_v11 }
  0xba   :  { %v245_v20 = vadd.f32 %v390_v14, %v234_v16  ;;  %v246_v21 = vadd.f32 %v391_v15, %v235_v17 }
  0xbc   :  { %v256_v22 = vadd.f32 %v392_v18, %v245_v20  ;;  %v257_v23 = vadd.f32 %v393_v19, %v246_v21 }
  0xbe   :  { %310 = vmatmul.f32.vlgmr.msra.gmra.mxu0 %v256_v22  ;;  %330 = vmatmul.f32.vlgmr.msra.gmra.mxu1 %v257_v23 }
 0x13b   :  { %v311_v24 = vpop.f32.mrf.mxu0  ;;  %v331_v27 = vpop.f32.mrf.mxu1 }
 0x13c   :  { %v312_v26 = vadd.f32 %v438_v32, %v311_v24 }
 0x13e   :  { %v332_v28 = vadd.f32 %v331_v27, %v312_v26 }
 0x140   :  { %439 = vtanh.f32 %v332_v28 }
 0x146   :  { %v440_v37 = vpop.eup %439 }
 0x147   :  { %v336_v29 = vsel %vm334_vm6, %v440_v37, %v332_v28 }
 0x148   :  { %337 = vst [vmem:[#allocation7] sm:$0xff] %v336_v29 }
 0x149   :  { %348 = dma.vmem_to_hbm [thread:$0]  %s344_s25, 128, %s346_s28, [#allocation4]  }
 0x14a   :  { %517 = dma.done.wait [#allocation4], 128  }
 0x14b   :  { %518 = vsyncadd [#allocation4], 4294967168 }
 0x14c   :  { %353 = vsyncpa [#allocation3], 1 }
 0x14d   :  { %354 = vsyncpa [#allocation6], 1 }
 0x14e   :  { %355 = vsyncpa [#allocation4], 1 }

</bundles_post_ra>
